<compile_context>
chip_gen: v6e
topology: v6e:2x2x1
jax: 0.10.0
libtpu: 0.0.40
codegen_flags: <defaults>
</compile_context>

<pallas_src>
import jax
import jax.numpy as jnp
from jax.experimental import pallas as pl
from jax.experimental.pallas import tpu as pltpu


def _emission_fused_kernel(x_ref, w_ref, b_ref, out_ref):
    # One MXU pass for both heads: x @ [W_mu | W_lv] + [b_mu | b_lv].
    s = jnp.dot(x_ref[...], w_ref[...], preferred_element_type=jnp.float32)
    out_ref[...] = (s + b_ref[...]).astype(out_ref.dtype)


def _round_up(x, m):
    return (x + m - 1) // m * m


def emission_normal_forward(latents, w_mu, b_mu, w_lv, b_lv, *,
                            block_rows=512, use_pallas=None):
    """Forward pass of EmissionNormalBase.

    latents: (*, latent_dim)
    returns: (obs_mean, obs_log_var), each shaped (*, obs_dim)
    """
    latent_dim = latents.shape[-1]
    obs_dim = w_mu.shape[-1]
    lead_shape = latents.shape[:-1]
    x2d = latents.reshape(-1, latent_dim)
    M = x2d.shape[0]
    n_out = 2 * obs_dim

    # Fuse the two heads once in the wrapper (constant-folded under jit).
    w_cat = jnp.concatenate([w_mu, w_lv], axis=-1)                 # (latent_dim, 2*obs_dim)
    b_cat = jnp.concatenate([b_mu, b_lv], axis=-1).reshape(1, n_out)

    if use_pallas is None:
        # Per-grid-step/launch overhead dominates for tiny M; let XLA fuse it.
        use_pallas = M >= 1024

    if not use_pallas:
        out2d = x2d @ w_cat + b_cat
    else:
        # Row tiling: TM multiple of 8, capped by block_rows; pad M so the
        # grid divides evenly (padding <= TM rows, sliced off afterwards).
        tm = _round_up(min(block_rows, _round_up(M, 8)), 8)
        m_pad = _round_up(M, tm)
        if m_pad != M:
            x2d = jnp.pad(x2d, ((0, m_pad - M), (0, 0)))
        grid = (m_pad // tm,)

        itemsize = jnp.dtype(latents.dtype).itemsize
        cost = pl.CostEstimate(
            flops=2 * m_pad * latent_dim * n_out,
            transcendentals=0,
            bytes_accessed=(m_pad * latent_dim + m_pad * n_out) * itemsize
                           + (w_cat.size + b_cat.size) * jnp.dtype(w_cat.dtype).itemsize,
        )

        out2d = pl.pallas_call(
            _emission_fused_kernel,
            out_shape=jax.ShapeDtypeStruct((m_pad, n_out), latents.dtype),
            grid_spec=pltpu.PrefetchScalarGridSpec(
                num_scalar_prefetch=0,
                grid=grid,
                in_specs=[
                    # Streamed row tile of the latents.
                    pl.BlockSpec((tm, latent_dim), lambda i: (i, 0)),
                    # Fused weights / bias: constant index map -> VMEM-resident.
                    pl.BlockSpec((latent_dim, n_out), lambda i: (0, 0)),
                    pl.BlockSpec((1, n_out), lambda i: (0, 0)),
                ],
                out_specs=pl.BlockSpec((tm, n_out), lambda i: (i, 0)),
            ),
            compiler_params=pltpu.CompilerParams(
                dimension_semantics=("parallel",)),
            cost_estimate=cost,
        )(x2d, w_cat, b_cat)
        out2d = out2d[:M]

    obs_mean = out2d[:, :obs_dim].reshape(*lead_shape, obs_dim)
    obs_log_var = out2d[:, obs_dim:].reshape(*lead_shape, obs_dim)
    return obs_mean, obs_log_var


def emission_normal_sample(emission_distribution, key):
    """sample(): mean + exp(0.5 * log_var) * standard normal noise (plain JAX glue)."""
    mean, log_var = emission_distribution
    eps = jax.random.normal(key, log_var.shape, dtype=log_var.dtype)
    return mean + jnp.exp(0.5 * log_var) * eps


if __name__ == "__main__":
    # Small shapes consistent with the module: latents of shape (*, latent_dim).
    batch, seq, latent_dim, obs_dim = 2, 8, 32, 16

    key = jax.random.PRNGKey(0)
    k_lat, k_wmu, k_bmu, k_wlv, k_blv, k_smp, k_lat2 = jax.random.split(key, 7)

    latents = jax.random.normal(k_lat, (batch, seq, latent_dim), dtype=jnp.float32)

    # Deterministic synthetic parameters for the two emission heads.
    w_mu = 0.1 * jax.random.normal(k_wmu, (latent_dim, obs_dim), dtype=jnp.float32)
    b_mu = 0.1 * jax.random.normal(k_bmu, (obs_dim,), dtype=jnp.float32)
    w_lv = 0.1 * jax.random.normal(k_wlv, (latent_dim, obs_dim), dtype=jnp.float32)
    b_lv = 0.1 * jax.random.normal(k_blv, (obs_dim,), dtype=jnp.float32)

    # Force the Pallas path so the kernel is actually exercised at small M.
    obs_mean, obs_log_var = emission_normal_forward(
        latents, w_mu, b_mu, w_lv, b_lv, use_pallas=True)
    obs_mean = jax.block_until_ready(obs_mean)
    obs_log_var = jax.block_until_ready(obs_log_var)

    # Reference check in plain JAX.
    ref_mean = latents.reshape(-1, latent_dim) @ w_mu + b_mu
    ref_lv = latents.reshape(-1, latent_dim) @ w_lv + b_lv
    assert jnp.allclose(obs_mean.reshape(-1, obs_dim), ref_mean, atol=1e-5)
    assert jnp.allclose(obs_log_var.reshape(-1, obs_dim), ref_lv, atol=1e-5)
    assert obs_mean.shape == (batch, seq, obs_dim)
    assert obs_log_var.shape == (batch, seq, obs_dim)

    # Also exercise the row-padding path (M not a multiple of 8 / TM).
    latents2 = jax.random.normal(k_lat2, (3, 7, latent_dim), dtype=jnp.float32)
    m2, lv2 = emission_normal_forward(latents2, w_mu, b_mu, w_lv, b_lv,
                                      use_pallas=True)
    m2 = jax.block_until_ready(m2)
    lv2 = jax.block_until_ready(lv2)
    ref_m2 = latents2.reshape(-1, latent_dim) @ w_mu + b_mu
    ref_lv2 = latents2.reshape(-1, latent_dim) @ w_lv + b_lv
    assert jnp.allclose(m2.reshape(-1, obs_dim), ref_m2, atol=1e-5)
    assert jnp.allclose(lv2.reshape(-1, obs_dim), ref_lv2, atol=1e-5)

    # Exercise sample() as well (plain JAX glue, not the hot path).
    smp = jax.block_until_ready(
        emission_normal_sample((obs_mean, obs_log_var), k_smp)
    )
    assert smp.shape == obs_mean.shape

    print("KERNEL_OK")
</pallas_src>

<mosaic_0001>
module attributes {stable_mosaic.version = 11 : i64} {
  func.func @_emission_fused_kernel(%arg0: i32, %arg1: memref<16x32xf32, #tpu.memory_space<vmem>>, %arg2: memref<32x32xf32, #tpu.memory_space<vmem>>, %arg3: memref<1x32xf32, #tpu.memory_space<vmem>>, %arg4: memref<16x32xf32, #tpu.memory_space<vmem>>) attributes {dimension_semantics = [#tpu.dimension_semantics<parallel>], iteration_bounds = array<i64: 1>, scalar_prefetch = 0 : i64, scratch_operands = 0 : i64, tpu.core_type = #tpu.core_type<tc>, window_params = [{transform_indices = @transform_0, window_bounds = array<i64: 16, 32>}, {pipeline_mode = #tpu.pipeline_mode<synchronous>, transform_indices = @transform_1, window_bounds = array<i64: 32, 32>}, {pipeline_mode = #tpu.pipeline_mode<synchronous>, transform_indices = @transform_2, window_bounds = array<i64: 1, 32>}, {transform_indices = @transform_3, window_bounds = array<i64: 16, 32>}]} {
    %c0 = arith.constant 0 : index
    %c0_0 = arith.constant 0 : index
    %0 = vector.load %arg1[%c0, %c0_0] : memref<16x32xf32, #tpu.memory_space<vmem>>, vector<16x32xf32>
    %c0_1 = arith.constant 0 : index
    %c0_2 = arith.constant 0 : index
    %1 = vector.load %arg2[%c0_1, %c0_2] : memref<32x32xf32, #tpu.memory_space<vmem>>, vector<32x32xf32>
    %cst = arith.constant dense<0.000000e+00> : vector<16x32xf32>
    %2 = tpu.matmul %0, %1, %cst {dimension_numbers = #tpu.dot_dimension_numbers<[1], [0], [0], [1], [0, 0, 1, 1], [], []>} : vector<16x32xf32>, vector<32x32xf32>, vector<16x32xf32> -> vector<16x32xf32>
    %c0_3 = arith.constant 0 : index
    %c0_4 = arith.constant 0 : index
    %3 = vector.load %arg3[%c0_3, %c0_4] : memref<1x32xf32, #tpu.memory_space<vmem>>, vector<1x32xf32>
    %4 = vector.broadcast %3 : vector<1x32xf32> to vector<16x32xf32>
    %5 = arith.addf %2, %4 : vector<16x32xf32>
    %c0_5 = arith.constant 0 : index
    %c0_6 = arith.constant 0 : index
    %6 = vector.load %arg4[%c0_5, %c0_6] : memref<16x32xf32, #tpu.memory_space<vmem>>, vector<16x32xf32>
    tpu.vector_store %arg4[%c0_5, %c0_6], %5 {strides = array<i32>} : memref<16x32xf32, #tpu.memory_space<vmem>>, vector<16x32xf32>,
    return
  }
  func.func @transform_0(%arg0: i32) -> (i32, i32) {
    %c0_i32 = arith.constant 0 : i32
    %c0_i32_0 = arith.constant 0 : i32
    return %arg0, %c0_i32 : i32, i32
  }
  func.func @transform_1(%arg0: i32) -> (i32, i32) {
    %c0_i32 = arith.constant 0 : i32
    %c0_i32_0 = arith.constant 0 : i32
    %c0_i32_1 = arith.constant 0 : i32
    return %c0_i32, %c0_i32_0 : i32, i32
  }
  func.func @transform_2(%arg0: i32) -> (i32, i32) {
    %c0_i32 = arith.constant 0 : i32
    %c0_i32_0 = arith.constant 0 : i32
    %c0_i32_1 = arith.constant 0 : i32
    return %c0_i32, %c0_i32_0 : i32, i32
  }
  func.func @transform_3(%arg0: i32) -> (i32, i32) {
    %c0_i32 = arith.constant 0 : i32
    %c0_i32_0 = arith.constant 0 : i32
    return %arg0, %c0_i32 : i32, i32
  }
}

</mosaic_0001>

<bundles_post_ra>
// kernel: tpu_custom_call.1
= control target key start
LH: loop header
LB: loop body
LE: loop exit
PB: predicated region body
PF: predicated region fallthrough
CT: control target
= control target key end

     0   :  { %8 = vsyncpa [#allocation3], 0  ;;  %s299_s0 = inlined_call_operand.hbm [shape: f32[16,32], index: 0, kind: input, shape index: {}]   ;;  %s300_s1 = inlined_call_operand.hbm [shape: f32[32,32], index: 1, kind: input, shape index: {}]   ;;  %s301_s2 = inlined_call_operand.vmem [shape: f32[1,32], index: 2, kind: input, shape index: {}]   ;;  %s302_s3 = inlined_call_operand.hbm [shape: f32[16,32], index: 3, kind: output, shape index: {}]  }
   0x1   :  { %9 = vsyncpa [#allocation6], 0 }
   0x2   :  { %10 = vsyncpa [#allocation4], 0  ;;  %s249_s12 = smov [#allocation2]  }
   0x3   :  { %s16_s13 = sshll.u32 %s249_s12, 4  ;;  %s17_s13 = int_to_ptr.vmem [resolvable:$true] %s16_s13 }
   0x4   :  { %s191_s14 = scalar_lea.vmem %s17_s13, 256  ;;  %p196_p1 = scmp.lt.s32.totalorder %s17_s13, %s17_s13 }
   0x5   :  { %p192_p0 = scmp.ne.s32.totalorder %s17_s13, %s191_s14  ;;  %p197_p2 = scmp.lt.s32.totalorder %s191_s14, %s191_s14 }
   0x7   :  { %p198_p3 = por %p197_p2, %p196_p1 }
   0x9   :  { %p199_p4 = pnand %p198_p3, %p192_p0 }
   0xb   :  { %202 = shalt.err (!%p199_p4)
}
   0xc   :  { %s250_s15 = smov 128   ;;  %s251_s16 = smov 8  }
   0xd   :  { %22 = dma.hbm_to_vmem [thread:$0]  %s299_s0, 256, %s17_s13, [#allocation3], %s250_s15, %s250_s15, %s251_s16  }
   0xe   :  { %s252_s19 = smov [#allocation5]  }
   0xf   :  { %s28_s20 = sshll.u32 %s252_s19, 4  ;;  %s29_s20 = int_to_ptr.vmem [resolvable:$true] %s28_s20 }
  0x10   :  { %s211_s21 = scalar_lea.vmem %s29_s20, 512  ;;  %p216_p6 = scmp.lt.s32.totalorder %s29_s20, %s29_s20 }
  0x11   :  { %p212_p5 = scmp.ne.s32.totalorder %s29_s20, %s211_s21  ;;  %p217_p7 = scmp.lt.s32.totalorder %s211_s21, %s211_s21 }
  0x13   :  { %p218_p8 = por %p217_p7, %p216_p6 }
  0x15   :  { %p219_p9 = pnand %p218_p8, %p212_p5 }
  0x17   :  { %222 = shalt.err (!%p219_p9)
}
  0x18   :  { %34 = dma.hbm_to_vmem [thread:$0]  %s300_s1, 512, %s29_s20, [#allocation6], %s250_s15, %s250_s15, %s251_s16  }
  0x19   :  { %243 = dma.done.wait [#allocation3], 256  }
  0x1a   :  { %244 = vsyncadd [#allocation3], 4294967040 }
  0x1b   :  { %245 = dma.done.wait [#allocation6], 512  }
  0x1c   :  { %246 = vsyncadd [#allocation6], 4294966784  ;;  %vm56_vm0 = vcmask 261120   ;;  %v48_v0 = vld [vmem:[#allocation5 + $0x18] sm:$0xff]  ;;  %v47_v1 = vld [vmem:[#allocation5 + $0x10] sm:$0xff]  ;;  %s253_s24 = smov [#allocation7]  }
  0x1d   :  { %167 = vmatprep.subr.mxu0 %v48_v0  ;;  %v43_v2 = vld [vmem:[#allocation2] sm:$0xff]  ;;  %v46_v3 = vld [vmem:[#allocation5 + $0x8] sm:$0xff]  ;;  %v45_v4 = vld [vmem:[#allocation5] sm:$0xff]  ;;  %s145_s25 = sshll.u32 %s253_s24, 4  ;;  %s146_s25 = int_to_ptr.vmem [resolvable:$true] %s145_s25 }
  0x1e   :  { %168 = vmatpush3.msra.mxu0 %v48_v0  ;;  %175 = vmatprep.mubr.msk.f32.mxu0 %vm56_vm0, %v43_v2  ;;  %v44_v5 = vld [vmem:[#allocation2 + $0x8] sm:$0xff]  ;;  %v158_v6 = vld [vmem:[%s301_s2] ss:$0 sm:$0xff]  ;;  %s223_s26 = scalar_lea.vmem %s146_s25, 256  ;;  %p228_p11 = scmp.lt.s32.totalorder %s146_s25, %s146_s25 }
  0x1f   :  { %169 = vmatprep.subr.mxu0 %v47_v1  ;;  %p224_p10 = scmp.ne.s32.totalorder %s146_s25, %s223_s26  ;;  %p229_p12 = scmp.lt.s32.totalorder %s223_s26, %s223_s26 }
  0x20   :  { %170 = vmatpush3.msra.mxu0 %v47_v1 }
  0x21   :  { %171 = vmatprep.subr.mxu0 %v46_v3  ;;  %p230_p13 = por %p229_p12, %p228_p11 }
  0x22   :  { %172 = vmatpush3.msra.mxu0 %v46_v3 }
  0x23   :  { %173 = vmatprep.subr.mxu0 %v45_v4  ;;  %p231_p0 = pnand %p230_p13, %p224_p10 }
  0x24   :  { %174 = vmatpush3.msra.mxu0 %v45_v4 }
  0x25   :  { %176 = vmatmul.mubr.msk.f32.vlgmr.msra.gmra.mxu0 %vm56_vm0, %v44_v5 }
  0xe5   :  { %v177_v7 = vpop.f32.mrf.mxu0 }
  0xe6   :  { %v135_v8 = vadd.f32 %v177_v7, %v158_v6 }
  0xe7   :  { %v129_v9 = vpop.f32.mrf.mxu0 }
  0xe8   :  { %139 = vst.msk [vmem:[#allocation7 + $0x8] sm:$0xff] %vm56_vm0, %v135_v8  ;;  %v130_v10 = vadd.f32 %v158_v6, %v129_v9 }
  0xea   :  { %138 = vst.msk [vmem:[#allocation7] sm:$0xff] %vm56_vm0, %v130_v10 }
  0xeb   :  { %234 = shalt.err (!%p231_p0)
}
  0xec   :  { %151 = dma.vmem_to_hbm [thread:$0]  %s146_s25, 256, %s302_s3, [#allocation4], %s250_s15, %s250_s15, %s251_s16  }
  0xed   :  { %247 = dma.done.wait [#allocation4], 256  }
  0xee   :  { %248 = vsyncadd [#allocation4], 4294967040 }
  0xef   :  { %155 = vsyncpa [#allocation3], 1 }
  0xf0   :  { %156 = vsyncpa [#allocation6], 1 }
  0xf1   :  { %157 = vsyncpa [#allocation4], 1 }

</bundles_post_ra>
